<compile_context>
chip_gen: v7x
topology: tpu7x:2x2x1
jax: 0.10.0
libtpu: 0.0.40
codegen_flags: <defaults>
</compile_context>

<pallas_src>
import jax
import jax.numpy as jnp
from jax.experimental import pallas as pl
from jax.experimental.pallas import tpu as pltpu

HIDDEN = 128


def _round_up(x, m):
    return ((x + m - 1) // m) * m


def _bqn_kernel(x_ref, w1_ref, b1_ref, w2_ref, b2_ref, wq_ref, bq_ref, q_ref):
    f32 = jnp.float32
    x = x_ref[...]

    # trunk: Linear(obs,128) + ReLU, Linear(128,128) + ReLU  (f32 accumulation)
    h1 = jnp.dot(x, w1_ref[...], preferred_element_type=f32) + b1_ref[...]
    h1 = jnp.maximum(h1, 0.0)
    h2 = jnp.dot(h1.astype(w2_ref.dtype), w2_ref[...],
                 preferred_element_type=f32) + b2_ref[...]
    h2 = jnp.maximum(h2, 0.0)

    # fused value + advantage + dueling-combine head: one matmul, one
    # unmasked lane-dense full-tile store.
    q = jnp.dot(h2.astype(wq_ref.dtype), wq_ref[...],
                preferred_element_type=f32) + bq_ref[...]
    q_ref[...] = q.astype(q_ref.dtype)


def init_params(key, obs_size, action_dim, n, hidden=HIDDEN):
    """Deterministic PyTorch-style init: U(-1/sqrt(fan_in), 1/sqrt(fan_in))."""
    ks = jax.random.split(key, 8)

    def lin(kw, kb, fan_in, fan_out):
        bound = 1.0 / jnp.sqrt(jnp.float32(fan_in))
        w = jax.random.uniform(kw, (fan_in, fan_out), jnp.float32, -bound, bound)
        b = jax.random.uniform(kb, (1, fan_out), jnp.float32, -bound, bound)
        return w, b

    w1, b1 = lin(ks[0], ks[1], obs_size, hidden)
    w2, b2 = lin(ks[2], ks[3], hidden, hidden)
    wv, bv = lin(ks[4], ks[5], hidden, 1)
    # adv_heads: action_dim separate Linear(hidden, n), packed along the out axis
    wa, ba = lin(ks[6], ks[7], hidden, action_dim * n)
    return (w1, b1, w2, b2, wv, bv, wa, ba)


def pack_params(params, *, action_dim, n, compute_dtype=jnp.bfloat16):
    """Pack raw params into the kernel layout (do once, reuse every forward).

    The dueling combine q = V + A - mean_branch(A) is folded into the head
    weights:  W_q[:, a*n+j] = wv + wa[:, a*n+j] - (1/n) sum_k wa[:, a*n+k]
    (same for the bias), zero-padded to a 128-multiple column count so the
    kernel's output store is lane-dense and unmasked.
    """
    w1, b1, w2, b2, wv, bv, wa, ba = params
    hidden = w1.shape[1]
    out = action_dim * n
    out_pad = _round_up(out, 128)

    per_branch = jnp.eye(n, dtype=jnp.float32) - jnp.full((n, n), 1.0 / n, jnp.float32)
    comb = jnp.kron(jnp.eye(action_dim, dtype=jnp.float32), per_branch)   # (out, out)

    w_q = wv @ jnp.ones((1, out), jnp.float32) + wa @ comb                # (hidden, out)
    b_q = bv @ jnp.ones((1, out), jnp.float32) + ba @ comb                # (1, out)

    w_q_pad = jnp.zeros((hidden, out_pad), jnp.float32).at[:, :out].set(w_q)
    b_q_pad = jnp.zeros((1, out_pad), jnp.float32).at[:, :out].set(b_q)

    return {
        "w1": w1.astype(compute_dtype), "b1": b1.astype(jnp.float32),
        "w2": w2.astype(compute_dtype), "b2": b2.astype(jnp.float32),
        "w_q": w_q_pad.astype(compute_dtype),
        "b_q": b_q_pad.astype(jnp.float32),
    }


def branching_q_forward(x, packed, *, action_dim, n, block_rows=2048,
                        out_dtype=jnp.float32):
    """x: (B, obs) float32. Returns q_val: (B, action_dim, n) in out_dtype."""
    B, obs = x.shape
    hidden = packed["w1"].shape[1]
    out_pad = packed["w_q"].shape[1]
    compute_dtype = packed["w1"].dtype

    # batch tile: multiple of the packed-sublane row count (16 for bf16, 8 for
    # f32); keep >= 2 grid tiles when B is large enough so the "parallel" axis
    # can shard across v7x's two TensorCores.
    sub = 16 if jnp.dtype(compute_dtype) == jnp.dtype(jnp.bfloat16) else 8
    bm = min(block_rows, _round_up(B, sub))
    if B >= 2 * sub:
        bm = min(bm, _round_up((B + 1) // 2, sub))
    b_pad = _round_up(B, bm)

    x_p = x.astype(compute_dtype)
    if b_pad != B:
        x_p = jnp.pad(x_p, ((0, b_pad - B), (0, 0)))

    # explicit VMEM budget (double-buffered x/q tiles + f32 intermediates +
    # resident weights), with headroom; stays far below v5e's 16 MiB scoped
    # default and v7x's 32 MiB scoped / 64 MiB physical.
    itemsize = jnp.dtype(compute_dtype).itemsize
    weight_bytes = (obs * hidden + hidden * hidden + hidden * out_pad) * itemsize \
        + (2 * hidden + out_pad) * 4
    est_bytes = (2 * bm * obs * itemsize            # x tile, double-buffered
                 + 2 * bm * out_pad * jnp.dtype(out_dtype).itemsize
                 + 3 * bm * hidden * 4              # h1 / h2 / q intermediates
                 + weight_bytes)
    vmem_limit = int(min(max(2 * est_bytes, 16 << 20), 48 << 20))

    def _wspec(shape):
        # weights/biases: same full block every grid step -> stay VMEM-resident
        return pl.BlockSpec(shape, lambda i: (0, 0))

    q_flat = pl.pallas_call(
        _bqn_kernel,
        out_shape=jax.ShapeDtypeStruct((b_pad, out_pad), out_dtype),
        grid_spec=pltpu.PrefetchScalarGridSpec(
            num_scalar_prefetch=0,
            grid=(b_pad // bm,),
            in_specs=[
                pl.BlockSpec((bm, obs), lambda i: (i, 0)),          # x (batch-tiled)
                _wspec((obs, hidden)), _wspec((1, hidden)),          # layer 1
                _wspec((hidden, hidden)), _wspec((1, hidden)),       # layer 2
                _wspec((hidden, out_pad)), _wspec((1, out_pad)),     # fused dueling head
            ],
            out_specs=pl.BlockSpec((bm, out_pad), lambda i: (i, 0)),
        ),
        compiler_params=pltpu.CompilerParams(
            dimension_semantics=("parallel",),      # shard batch tiles across TCs
            vmem_limit_bytes=vmem_limit,
        ),
    )(x_p, packed["w1"], packed["b1"], packed["w2"], packed["b2"],
      packed["w_q"], packed["b_q"])

    # Consumers that can work on the padded (b_pad, out_pad) buffer should take
    # q_flat directly; this slice+reshape is only for the nominal output shape.
    return q_flat[:B, :action_dim * n].reshape(B, action_dim, n)


def _reference_forward(x, params, *, action_dim, n):
    """Pure-JAX reference mirroring the PyTorch forward exactly."""
    w1, b1, w2, b2, wv, bv, wa, ba = params
    h = jnp.maximum(x @ w1 + b1, 0.0)
    h = jnp.maximum(h @ w2 + b2, 0.0)
    value = h @ wv + bv                                        # (B, 1)
    advs = (h @ wa + ba).reshape(x.shape[0], action_dim, n)    # (B, ad, n)
    q = value[:, :, None] + advs - advs.mean(axis=2, keepdims=True)
    return q


if __name__ == "__main__":
    # BipedalWalker-ish small config
    obs_size, action_dim, n = 24, 4, 6

    key = jax.random.PRNGKey(0)
    kx, kp, kx2 = jax.random.split(key, 3)
    params = init_params(kp, obs_size, action_dim, n)

    # --- small batch, f32 compute: exact check against the reference ---------
    x = jax.random.normal(kx, (8, obs_size), jnp.float32)
    packed_f32 = pack_params(params, action_dim=action_dim, n=n,
                             compute_dtype=jnp.float32)
    q = branching_q_forward(x, packed_f32, action_dim=action_dim, n=n)
    q = jax.block_until_ready(q)
    q_ref = _reference_forward(x, params, action_dim=action_dim, n=n)
    assert q.shape == (8, action_dim, n)
    assert jnp.allclose(q, q_ref, atol=1e-4, rtol=1e-4), "f32 mismatch vs reference"

    # --- larger non-multiple batch: exercises the 2-tile parallel grid + padding
    x_big = jax.random.normal(kx2, (1029, obs_size), jnp.float32)
    q_big = branching_q_forward(x_big, packed_f32, action_dim=action_dim, n=n)
    q_big = jax.block_until_ready(q_big)
    q_big_ref = _reference_forward(x_big, params, action_dim=action_dim, n=n)
    assert jnp.allclose(q_big, q_big_ref, atol=1e-4, rtol=1e-4), "grid mismatch"

    # --- default bf16 matmul inputs (v5e/v6e/v7x fast path), f32 accumulation -
    packed_bf16 = pack_params(params, action_dim=action_dim, n=n)   # bf16 default
    q_bf16 = branching_q_forward(x_big, packed_bf16, action_dim=action_dim, n=n)
    q_bf16 = jax.block_until_ready(q_bf16)
    assert jnp.allclose(q_bf16, q_big_ref, atol=5e-2, rtol=5e-2), "bf16 mismatch"

    print("KERNEL_OK")
</pallas_src>

<mosaic_0001>
module attributes {stable_mosaic.version = 11 : i64} {
  func.func @_bqn_kernel(%arg0: i32, %arg1: memref<8x24xf32, #tpu.memory_space<vmem>>, %arg2: memref<24x128xf32, #tpu.memory_space<vmem>>, %arg3: memref<1x128xf32, #tpu.memory_space<vmem>>, %arg4: memref<128x128xf32, #tpu.memory_space<vmem>>, %arg5: memref<1x128xf32, #tpu.memory_space<vmem>>, %arg6: memref<128x128xf32, #tpu.memory_space<vmem>>, %arg7: memref<1x128xf32, #tpu.memory_space<vmem>>, %arg8: memref<8x128xf32, #tpu.memory_space<vmem>>) attributes {dimension_semantics = [#tpu.dimension_semantics<parallel>], iteration_bounds = array<i64: 1>, scalar_prefetch = 0 : i64, scratch_operands = 0 : i64, tpu.core_type = #tpu.core_type<tc>, window_params = [{transform_indices = @transform_0, window_bounds = array<i64: 8, 24>}, {pipeline_mode = #tpu.pipeline_mode<synchronous>, transform_indices = @transform_1, window_bounds = array<i64: 24, 128>}, {pipeline_mode = #tpu.pipeline_mode<synchronous>, transform_indices = @transform_2, window_bounds = array<i64: 1, 128>}, {pipeline_mode = #tpu.pipeline_mode<synchronous>, transform_indices = @transform_3, window_bounds = array<i64: 128, 128>}, {pipeline_mode = #tpu.pipeline_mode<synchronous>, transform_indices = @transform_4, window_bounds = array<i64: 1, 128>}, {pipeline_mode = #tpu.pipeline_mode<synchronous>, transform_indices = @transform_5, window_bounds = array<i64: 128, 128>}, {pipeline_mode = #tpu.pipeline_mode<synchronous>, transform_indices = @transform_6, window_bounds = array<i64: 1, 128>}, {transform_indices = @transform_7, window_bounds = array<i64: 8, 128>}]} {
    %c0 = arith.constant 0 : index
    %c0_0 = arith.constant 0 : index
    %0 = vector.load %arg1[%c0, %c0_0] : memref<8x24xf32, #tpu.memory_space<vmem>>, vector<8x24xf32>
    %c0_1 = arith.constant 0 : index
    %c0_2 = arith.constant 0 : index
    %1 = vector.load %arg2[%c0_1, %c0_2] : memref<24x128xf32, #tpu.memory_space<vmem>>, vector<24x128xf32>
    %cst = arith.constant dense<0.000000e+00> : vector<8x128xf32>
    %2 = tpu.matmul %0, %1, %cst {dimension_numbers = #tpu.dot_dimension_numbers<[1], [0], [0], [1], [0, 0, 1, 1], [], []>} : vector<8x24xf32>, vector<24x128xf32>, vector<8x128xf32> -> vector<8x128xf32>
    %c0_3 = arith.constant 0 : index
    %c0_4 = arith.constant 0 : index
    %3 = vector.load %arg3[%c0_3, %c0_4] : memref<1x128xf32, #tpu.memory_space<vmem>>, vector<1x128xf32>
    %4 = vector.broadcast %3 : vector<1x128xf32> to vector<8x128xf32>
    %5 = arith.addf %2, %4 : vector<8x128xf32>
    %cst_5 = arith.constant 0.000000e+00 : f32
    %6 = vector.broadcast %cst_5 : f32 to vector<8x128xf32>
    %7 = arith.maximumf %5, %6 : vector<8x128xf32>
    %c0_6 = arith.constant 0 : index
    %c0_7 = arith.constant 0 : index
    %8 = vector.load %arg4[%c0_6, %c0_7] : memref<128x128xf32, #tpu.memory_space<vmem>>, vector<128x128xf32>
    %cst_8 = arith.constant dense<0.000000e+00> : vector<8x128xf32>
    %9 = tpu.matmul %7, %8, %cst_8 {dimension_numbers = #tpu.dot_dimension_numbers<[1], [0], [0], [1], [0, 0, 1, 1], [], []>} : vector<8x128xf32>, vector<128x128xf32>, vector<8x128xf32> -> vector<8x128xf32>
    %c0_9 = arith.constant 0 : index
    %c0_10 = arith.constant 0 : index
    %10 = vector.load %arg5[%c0_9, %c0_10] : memref<1x128xf32, #tpu.memory_space<vmem>>, vector<1x128xf32>
    %11 = vector.broadcast %10 : vector<1x128xf32> to vector<8x128xf32>
    %12 = arith.addf %9, %11 : vector<8x128xf32>
    %cst_11 = arith.constant 0.000000e+00 : f32
    %13 = vector.broadcast %cst_11 : f32 to vector<8x128xf32>
    %14 = arith.maximumf %12, %13 : vector<8x128xf32>
    %c0_12 = arith.constant 0 : index
    %c0_13 = arith.constant 0 : index
    %15 = vector.load %arg6[%c0_12, %c0_13] : memref<128x128xf32, #tpu.memory_space<vmem>>, vector<128x128xf32>
    %cst_14 = arith.constant dense<0.000000e+00> : vector<8x128xf32>
    %16 = tpu.matmul %14, %15, %cst_14 {dimension_numbers = #tpu.dot_dimension_numbers<[1], [0], [0], [1], [0, 0, 1, 1], [], []>} : vector<8x128xf32>, vector<128x128xf32>, vector<8x128xf32> -> vector<8x128xf32>
    %c0_15 = arith.constant 0 : index
    %c0_16 = arith.constant 0 : index
    %17 = vector.load %arg7[%c0_15, %c0_16] : memref<1x128xf32, #tpu.memory_space<vmem>>, vector<1x128xf32>
    %18 = vector.broadcast %17 : vector<1x128xf32> to vector<8x128xf32>
    %19 = arith.addf %16, %18 : vector<8x128xf32>
    %c0_17 = arith.constant 0 : index
    %c0_18 = arith.constant 0 : index
    %20 = vector.load %arg8[%c0_17, %c0_18] : memref<8x128xf32, #tpu.memory_space<vmem>>, vector<8x128xf32>
    tpu.vector_store %arg8[%c0_17, %c0_18], %19 {strides = array<i32>} : memref<8x128xf32, #tpu.memory_space<vmem>>, vector<8x128xf32>,
    return
  }
  func.func @transform_0(%arg0: i32) -> (i32, i32) {
    %c0_i32 = arith.constant 0 : i32
    %c0_i32_0 = arith.constant 0 : i32
    return %arg0, %c0_i32 : i32, i32
  }
  func.func @transform_1(%arg0: i32) -> (i32, i32) {
    %c0_i32 = arith.constant 0 : i32
    %c0_i32_0 = arith.constant 0 : i32
    %c0_i32_1 = arith.constant 0 : i32
    return %c0_i32, %c0_i32_0 : i32, i32
  }
  func.func @transform_2(%arg0: i32) -> (i32, i32) {
    %c0_i32 = arith.constant 0 : i32
    %c0_i32_0 = arith.constant 0 : i32
    %c0_i32_1 = arith.constant 0 : i32
    return %c0_i32, %c0_i32_0 : i32, i32
  }
  func.func @transform_3(%arg0: i32) -> (i32, i32) {
    %c0_i32 = arith.constant 0 : i32
    %c0_i32_0 = arith.constant 0 : i32
    %c0_i32_1 = arith.constant 0 : i32
    return %c0_i32, %c0_i32_0 : i32, i32
  }
  func.func @transform_4(%arg0: i32) -> (i32, i32) {
    %c0_i32 = arith.constant 0 : i32
    %c0_i32_0 = arith.constant 0 : i32
    %c0_i32_1 = arith.constant 0 : i32
    return %c0_i32, %c0_i32_0 : i32, i32
  }
  func.func @transform_5(%arg0: i32) -> (i32, i32) {
    %c0_i32 = arith.constant 0 : i32
    %c0_i32_0 = arith.constant 0 : i32
    %c0_i32_1 = arith.constant 0 : i32
    return %c0_i32, %c0_i32_0 : i32, i32
  }
  func.func @transform_6(%arg0: i32) -> (i32, i32) {
    %c0_i32 = arith.constant 0 : i32
    %c0_i32_0 = arith.constant 0 : i32
    %c0_i32_1 = arith.constant 0 : i32
    return %c0_i32, %c0_i32_0 : i32, i32
  }
  func.func @transform_7(%arg0: i32) -> (i32, i32) {
    %c0_i32 = arith.constant 0 : i32
    %c0_i32_0 = arith.constant 0 : i32
    return %arg0, %c0_i32 : i32, i32
  }
}

</mosaic_0001>

<bundles_post_ra>
// kernel: tpu_custom_call.1
= control target key start
LH: loop header
LB: loop body
LE: loop exit
PB: predicated region body
PF: predicated region fallthrough
CT: control target
= control target key end

     0   :  { %12 = vsyncpa [#allocation3], 0  ;;  %s819_s0 = inlined_call_operand.hbm [shape: f32[8,24], index: 0, kind: input, shape index: {}]   ;;  %s820_s1 = inlined_call_operand.hbm [shape: f32[24,128], index: 1, kind: input, shape index: {}]   ;;  %s821_s2 = inlined_call_operand.vmem [shape: f32[1,128], index: 2, kind: input, shape index: {}]   ;;  %s822_s3 = inlined_call_operand.hbm [shape: f32[128,128], index: 3, kind: input, shape index: {}]   ;;  %s823_s4 = inlined_call_operand.vmem [shape: f32[1,128], index: 4, kind: input, shape index: {}]   ;;  %s824_s5 = inlined_call_operand.hbm [shape: f32[128,128], index: 5, kind: input, shape index: {}]   ;;  %s825_s6 = inlined_call_operand.vmem [shape: f32[1,128], index: 6, kind: input, shape index: {}]   ;;  %s826_s7 = inlined_call_operand.hbm [shape: f32[8,128], index: 7, kind: output, shape index: {}]  }
   0x1   :  { %13 = vsyncpa [#allocation6], 0 }
   0x2   :  { %14 = vsyncpa [#allocation9], 0 }
   0x3   :  { %15 = vsyncpa [#allocation4], 0  ;;  %s671_s24 = smov [#allocation5]   ;;  %s553_s28 = scalar_lea.hbm %s820_s1, 384 }
   0x4   :  { %s31_s25 = sshll.u32 %s671_s24, 4  ;;  %p554_p0 = scmp.ne.s32.totalorder %s820_s1, %s553_s28  ;;  %s32_s25 = int_to_ptr.vmem [resolvable:$true] %s31_s25 }
   0x5   :  { %p557_p1 = scmp.lt.u32.totalorder %s553_s28, %s820_s1 }
   0x7   :  { %p559_p2 = pnand %p557_p1, %p554_p0 }
   0x9   :  { %562 = shalt.err (!%p559_p2)
}
   0xa   :  { %s563_s10 = scalar_lea.vmem %s32_s25, 384  ;;  %p568_p4 = scmp.lt.s32.totalorder %s32_s25, %s32_s25 }
   0xb   :  { %p564_p3 = scmp.ne.s32.totalorder %s32_s25, %s563_s10  ;;  %p569_p5 = scmp.lt.s32.totalorder %s563_s10, %s563_s10 }
   0xd   :  { %p570_p6 = por %p569_p5, %p568_p4 }
   0xf   :  { %p571_p7 = pnand %p570_p6, %p564_p3 }
  0x11   :  { %574 = shalt.err (!%p571_p7)
}
  0x12   :  { %s672_s11 = smov 128   ;;  %s673_s12 = smov 8  }
  0x13   :  { %37 = dma.hbm_to_vmem [thread:$0]  %s820_s1, 384, %s32_s25, [#allocation6], %s672_s11, %s672_s11, %s673_s12  }
  0x14   :  { %s674_s15 = smov [#allocation2]   ;;  %s675_s17 = smov [#allocation7]  }
  0x15   :  { %s22_s16 = sshll.u32 %s674_s15, 4  ;;  %s45_s18 = sshll.u32 %s675_s17, 4  ;;  %s23_s16 = int_to_ptr.vmem [resolvable:$true] %s22_s16  ;;  %s46_s18 = int_to_ptr.vmem [resolvable:$true] %s45_s18 }
  0x16   :  { %s575_s21 = scalar_lea.hbm %s819_s0, 128 }
  0x17   :  { %p576_p8 = scmp.ne.s32.totalorder %s819_s0, %s575_s21  ;;  %p579_p9 = scmp.lt.u32.totalorder %s575_s21, %s819_s0 }
  0x19   :  { %p581_p10 = pnand %p579_p9, %p576_p8 }
  0x1b   :  { %584 = shalt.err (!%p581_p10)
}
  0x1c   :  { %s585_s1 = scalar_lea.vmem %s23_s16, 128  ;;  %p590_p12 = scmp.lt.s32.totalorder %s23_s16, %s23_s16 }
  0x1d   :  { %p586_p11 = scmp.ne.s32.totalorder %s23_s16, %s585_s1  ;;  %p591_p13 = scmp.lt.s32.totalorder %s585_s1, %s585_s1 }
  0x1f   :  { %p592_p0 = por %p591_p13, %p590_p12 }
  0x21   :  { %p593_p1 = pnand %p592_p0, %p586_p11 }
  0x23   :  { %596 = shalt.err (!%p593_p1)
}
  0x24   :  { %25 = dma.hbm_to_vmem [thread:$0]  %s819_s0, 128, %s23_s16, [#allocation3]  }
  0x25   :  { %s597_s30 = scalar_lea.hbm %s822_s3, 2048 }
  0x26   :  { %p598_p2 = scmp.ne.s32.totalorder %s822_s3, %s597_s30  ;;  %p601_p3 = scmp.lt.u32.totalorder %s597_s30, %s822_s3 }
  0x28   :  { %p603_p4 = pnand %p601_p3, %p598_p2 }
  0x2a   :  { %606 = shalt.err (!%p603_p4)
}
  0x2b   :  { %s607_s14 = scalar_lea.vmem %s46_s18, 2048  ;;  %p612_p6 = scmp.lt.s32.totalorder %s46_s18, %s46_s18 }
  0x2c   :  { %p608_p5 = scmp.ne.s32.totalorder %s46_s18, %s607_s14  ;;  %p613_p7 = scmp.lt.s32.totalorder %s607_s14, %s607_s14 }
  0x2e   :  { %p614_p8 = por %p613_p7, %p612_p6 }
  0x30   :  { %p615_p9 = pnand %p614_p8, %p608_p5 }
  0x32   :  { %618 = shalt.err (!%p615_p9)
}
  0x33   :  { %51 = dma.hbm_to_vmem [thread:$0]  %s822_s3, 2048, %s46_s18, [#allocation6], %s672_s11, %s672_s11, %s673_s12  }
  0x34   :  { %s676_s16 = smov [#allocation8]   ;;  %s619_s21 = scalar_lea.hbm %s824_s5, 2048 }
  0x35   :  { %s59_s17 = sshll.u32 %s676_s16, 4  ;;  %p620_p10 = scmp.ne.s32.totalorder %s824_s5, %s619_s21  ;;  %s60_s17 = int_to_ptr.vmem [resolvable:$true] %s59_s17 }
  0x36   :  { %p623_p11 = scmp.lt.u32.totalorder %s619_s21, %s824_s5 }
  0x38   :  { %p625_p12 = pnand %p623_p11, %p620_p10 }
  0x3a   :  { %628 = shalt.err (!%p625_p12)
}
  0x3b   :  { %s629_s1 = scalar_lea.vmem %s60_s17, 2048  ;;  %p634_p0 = scmp.lt.s32.totalorder %s60_s17, %s60_s17 }
  0x3c   :  { %p630_p13 = scmp.ne.s32.totalorder %s60_s17, %s629_s1  ;;  %p635_p1 = scmp.lt.s32.totalorder %s629_s1, %s629_s1 }
  0x3e   :  { %p636_p2 = por %p635_p1, %p634_p0 }
  0x40   :  { %p637_p3 = pnand %p636_p2, %p630_p13 }
  0x42   :  { %640 = shalt.err (!%p637_p3)
}
  0x43   :  { %65 = dma.hbm_to_vmem [thread:$0]  %s824_s5, 2048, %s60_s17, [#allocation9], %s672_s11, %s672_s11, %s673_s12  }
  0x44   :  { %663 = dma.done.wait [#allocation3], 128  }
  0x45   :  { %664 = vsyncadd [#allocation3], 4294967168 }
  0x46   :  { %665 = dma.done.wait [#allocation6], 2432  }
  0x47   :  { %666 = vsyncadd [#allocation6], 4294964864 }
  0x48   :  { %667 = dma.done.wait [#allocation9], 2048  }
  0x49   :  { %668 = vsyncadd [#allocation9], 4294965248  ;;  %v677_v0 = vmov 0.0|0.0   ;;  %vm678_vm0 = vmmov 0   ;;  %v679_v1 = vmov 0.0   ;;  %v81_v2 = vld [vmem:[#allocation5] sm:$0xff] }
  0x4a   :  { %492 = vmatprep.subr.bf16.mxu0 %v677_v0  ;;  %419 = vmatprep.mubr.msk.f32.mxu0 %vm678_vm0, %v679_v1  ;;  %v82_v3 = vld [vmem:[#allocation5 + $0x8] sm:$0xff]  ;;  %v166_v5 = vld [vmem:[#allocation7] sm:$0xff]  ;;  %v167_v6 = vld [vmem:[#allocation7 + $0x8] sm:$0xff]  ;;  %vm91_vm1 = vcmask 195584   ;;  %s680_s28 = smov [#allocation10]  }
  0x4b   :  { %495 = vmatprep.subr.bf16.mxu1 %v677_v0  ;;  %454 = vmatprep.mubr.msk.f32.mxu1 %vm678_vm0, %v679_v1  ;;  %v493_v4 = vpack.c.bf16 %v82_v3, %v81_v2  ;;  %v496_v7 = vpack.c.bf16 %v167_v6, %v166_v5  ;;  %v168_v8 = vld [vmem:[#allocation7 + $0x10] sm:$0xff]  ;;  %v169_v9 = vld [vmem:[#allocation7 + $0x18] sm:$0xff]  ;;  %v80_v12 = vld [vmem:[#allocation2] sm:$0xff]  ;;  %s360_s29 = sshll.u32 %s680_s28, 4  ;;  %s361_s29 = int_to_ptr.vmem [resolvable:$true] %s360_s29 }
  0x4c   :  { %v83_v10 = vld [vmem:[#allocation5 + $0x10] sm:$0xff]  ;;  %v499_v11 = vpack.c.bf16 %v169_v9, %v168_v8  ;;  %v170_v13 = vld [vmem:[#allocation7 + $0x20] sm:$0xff]  ;;  %v171_v14 = vld [vmem:[#allocation7 + $0x28] sm:$0xff]  ;;  %s641_s30 = scalar_lea.vmem %s361_s29, 128  ;;  %p646_p5 = scmp.lt.s32.totalorder %s361_s29, %s361_s29 }
  0x4d   :  { %494 = vmatpush3.bf16.msra.mxu0 %v493_v4  ;;  %497 = vmatpush3.bf16.msra.mxu1 %v496_v7  ;;  %v502_v15 = vpack.c.bf16 %v171_v14, %v170_v13  ;;  %v172_v16 = vld [vmem:[#allocation7 + $0x30] sm:$0xff]  ;;  %v173_v17 = vld [vmem:[#allocation7 + $0x38] sm:$0xff]  ;;  %v174_v19 = vld [vmem:[#allocation7 + $0x40] sm:$0xff]  ;;  %p642_p4 = scmp.ne.s32.totalorder %s361_s29, %s641_s30  ;;  %p647_p6 = scmp.lt.s32.totalorder %s641_s30, %s641_s30 }
  0x4e   :  { %417 = vmatprep.subr.mxu0 %v679_v1  ;;  %498 = vmatprep.subr.bf16.mxu1 %v677_v0  ;;  %v505_v18 = vpack.c.bf16 %v173_v17, %v172_v16  ;;  %v175_v20 = vld [vmem:[#allocation7 + $0x48] sm:$0xff]  ;;  %v176_v22 = vld [vmem:[#allocation7 + $0x50] sm:$0xff]  ;;  %v177_v23 = vld [vmem:[#allocation7 + $0x58] sm:$0xff] }
  0x4f   :  { %v508_v21 = vpack.c.bf16 %v175_v20, %v174_v19  ;;  %v511_v24 = vpack.c.bf16 %v177_v23, %v176_v22  ;;  %v178_v25 = vld [vmem:[#allocation7 + $0x60] sm:$0xff]  ;;  %v179_v26 = vld [vmem:[#allocation7 + $0x68] sm:$0xff]  ;;  %v180_v28 = vld [vmem:[#allocation7 + $0x70] sm:$0xff]  ;;  %p648_p7 = por %p647_p6, %p646_p5 }
  0x50   :  { %v514_v27 = vpack.c.bf16 %v179_v26, %v178_v25  ;;  %v181_v29 = vld [vmem:[#allocation7 + $0x78] sm:$0xff]  ;;  %v260_v31 = vld [vmem:[#allocation8] sm:$0xff]  ;;  %v261_v32 = vld [vmem:[#allocation8 + $0x8] sm:$0xff] }
  0x51   :  { %418 = vmatpush3.msra.mxu0 %v83_v10  ;;  %500 = vmatpush3.bf16.msra.mxu1 %v499_v11  ;;  %v517_v30 = vpack.c.bf16 %v181_v29, %v180_v28  ;;  %v262_v33 = vld [vmem:[#allocation8 + $0x10] sm:$0xff]  ;;  %v520_v34 = vpack.c.bf16 %v261_v32, %v260_v31  ;;  %v263_v35 = vld [vmem:[#allocation8 + $0x18] sm:$0xff]  ;;  %v264_v37 = vld [vmem:[#allocation8 + $0x20] sm:$0xff]  ;;  %p649_p8 = pnand %p648_p7, %p642_p4 }
  0x52   :  { %420 = vmatmul.mubr.msk.f32.vlgmr.msra.gmra.mrb[0].mxu0 %vm91_vm1, %v80_v12  ;;  %501 = vmatprep.subr.bf16.mxu1 %v677_v0  ;;  %v523_v36 = vpack.c.bf16 %v263_v35, %v262_v33  ;;  %v265_v38 = vld [vmem:[#allocation8 + $0x28] sm:$0xff]  ;;  %v266_v40 = vld [vmem:[#allocation8 + $0x30] sm:$0xff]  ;;  %v267_v41 = vld [vmem:[#allocation8 + $0x38] sm:$0xff] }
  0x53   :  { %519 = vmatprep.subr.bf16.mxu0 %v677_v0  ;;  %489 = vmatprep.mubr.msk.f32.mxu0 %vm678_vm0, %v679_v1  ;;  %v526_v39 = vpack.c.bf16 %v265_v38, %v264_v37  ;;  %v529_v42 = vpack.c.bf16 %v267_v41, %v266_v40  ;;  %v268_v43 = vld [vmem:[#allocation8 + $0x40] sm:$0xff]  ;;  %v269_v44 = vld [vmem:[#allocation8 + $0x48] sm:$0xff]  ;;  %v270_v46 = vld [vmem:[#allocation8 + $0x50] sm:$0xff] }
  0x54   :  { %521 = vmatpush3.bf16.msra.mxu0 %v520_v34  ;;  %v532_v45 = vpack.c.bf16 %v269_v44, %v268_v43  ;;  %v271_v47 = vld [vmem:[#allocation8 + $0x58] sm:$0xff]  ;;  %v272_v49 = vld [vmem:[#allocation8 + $0x60] sm:$0xff]  ;;  %v273_v50 = vld [vmem:[#allocation8 + $0x68] sm:$0xff] }
  0x55   :  { %503 = vmatpush3.bf16.msra.mxu1 %v502_v15  ;;  %522 = vmatprep.subr.bf16.mxu0 %v677_v0  ;;  %v535_v48 = vpack.c.bf16 %v271_v47, %v270_v46  ;;  %v538_v51 = vpack.c.bf16 %v273_v50, %v272_v49  ;;  %v371_v52 = vld [vmem:[%s821_s2] ss:$0 sm:$0xff]  ;;  %v274_v57 = vld [vmem:[#allocation8 + $0x70] sm:$0xff]  ;;  %v275_v58 = vld [vmem:[#allocation8 + $0x78] sm:$0xff] }
  0x56   :  { %504 = vmatprep.subr.bf16.mxu1 %v677_v0  ;;  %v541_v59 = vpack.c.bf16 %v275_v58, %v274_v57  ;;  %v373_v60 = vld [vmem:[%s823_s4] ss:$0 sm:$0xff] }
  0x57   :  { %v374_v1 = vld [vmem:[%s825_s6] ss:$0 sm:$0xff] }
  0x58   :  { %524 = vmatpush3.bf16.msra.mxu0 %v523_v36 }
  0x59   :  { %506 = vmatpush3.bf16.msra.mxu1 %v505_v18  ;;  %525 = vmatprep.subr.bf16.mxu0 %v677_v0 }
  0x5a   :  { %507 = vmatprep.subr.bf16.mxu1 %v677_v0 }
  0x5c   :  { %527 = vmatpush3.bf16.msra.mxu0 %v526_v39 }
  0x5d   :  { %509 = vmatpush3.bf16.msra.mxu1 %v508_v21  ;;  %528 = vmatprep.subr.bf16.mxu0 %v677_v0 }
  0x5e   :  { %510 = vmatprep.subr.bf16.mxu1 %v677_v0 }
  0x60   :  { %530 = vmatpush3.bf16.msra.mxu0 %v529_v42 }
  0x61   :  { %512 = vmatpush3.bf16.msra.mxu1 %v511_v24  ;;  %531 = vmatprep.subr.bf16.mxu0 %v677_v0 }
  0x62   :  { %513 = vmatprep.subr.bf16.mxu1 %v677_v0 }
  0x64   :  { %533 = vmatpush3.bf16.msra.mxu0 %v532_v45 }
  0x65   :  { %515 = vmatpush3.bf16.msra.mxu1 %v514_v27  ;;  %534 = vmatprep.subr.bf16.mxu0 %v677_v0 }
  0x66   :  { %516 = vmatprep.subr.bf16.mxu1 %v677_v0 }
  0x68   :  { %536 = vmatpush3.bf16.msra.mxu0 %v535_v48 }
  0x69   :  { %518 = vmatpush3.bf16.msra.mxu1 %v517_v30  ;;  %537 = vmatprep.subr.bf16.mxu0 %v677_v0 }
  0x6c   :  { %539 = vmatpush3.bf16.msra.mxu0 %v538_v51 }
  0x6d   :  { %540 = vmatprep.subr.bf16.mxu0 %v677_v0 }
  0x70   :  { %542 = vmatpush3.bf16.msra.mxu0 %v541_v59 }
 0x125   :  { %v161_v53 = vpop.f32.mrb[0].mxu0 }
 0x126   :  { %v162_v54 = vadd.f32 %v371_v52, %v161_v53  ;;  %v421_v55 = vpop.f32.mrb[1].mxu0 }
 0x128   :  { %v165_v56 = vmax.f32 %v162_v54, 0.0 }
 0x12a   :  { %455 = vmatmul.mubr.f32.vlgmr.msra.gmra.mrb[0].mxu1 %v165_v56 }
 0x1fd   :  { %v255_v61 = vpop.f32.mrb[0].mxu1 }
 0x1fe   :  { %v256_v62 = vadd.f32 %v373_v60, %v255_v61  ;;  %v456_v63 = vpop.f32.mrb[1].mxu1 }
 0x200   :  { %v259_v0 = vmax.f32 %v256_v62, 0.0 }
 0x202   :  { %490 = vmatmul.mubr.f32.vlgmr.msra.gmra.mrb[2].mxu0 %v259_v0 }
 0x2d5   :  { %v349_v2 = vpop.f32.mrb[2].mxu0 }
 0x2d6   :  { %v350_v3 = vadd.f32 %v374_v1, %v349_v2  ;;  %v491_v4 = vpop.f32.mrb[3].mxu0 }
 0x2d8   :  { %353 = vst [vmem:[#allocation10] sm:$0xff] %v350_v3 }
 0x2d9   :  { %652 = shalt.err (!%p649_p8)
}
 0x2da   :  { %s653_s9 = scalar_lea.hbm %s826_s7, 128 }
 0x2db   :  { %p654_p9 = scmp.ne.s32.totalorder %s826_s7, %s653_s9  ;;  %p657_p10 = scmp.lt.u32.totalorder %s653_s9, %s826_s7 }
 0x2dd   :  { %p659_p11 = pnand %p657_p10, %p654_p9 }
 0x2df   :  { %662 = shalt.err (!%p659_p11)
}
 0x2e0   :  { %363 = dma.vmem_to_hbm [thread:$0]  %s361_s29, 128, %s826_s7, [#allocation4]  }
 0x2e1   :  { %669 = dma.done.wait [#allocation4], 128  }
 0x2e2   :  { %670 = vsyncadd [#allocation4], 4294967168 }
 0x2e3   :  { %367 = vsyncpa [#allocation3], 1 }
 0x2e4   :  { %368 = vsyncpa [#allocation6], 1 }
 0x2e5   :  { %369 = vsyncpa [#allocation9], 1 }
 0x2e6   :  { %370 = vsyncpa [#allocation4], 1 }

</bundles_post_ra>
